<compile_context>
chip_gen: v7x
topology: tpu7x:2x2x1
jax: 0.10.0
libtpu: 0.0.40
codegen_flags: <defaults>
</compile_context>

<pallas_src>
import functools

import jax
import jax.numpy as jnp
from jax.experimental import pallas as pl
from jax.experimental.pallas import tpu as pltpu


def _cdiv(a, b):
    return -(-a // b)


def _round_up(a, b):
    return _cdiv(a, b) * b


def _focal_loss_kernel(labels_ref, preds_ref, out_ref, acc_ref, *, gamma, inv_n):
    """One (C, tile) block of class-major logits; accumulates the focal-loss sum."""
    i = pl.program_id(1)  # sample-tile index within this core's slice (reduction axis)

    @pl.when(i == 0)
    def _init():
        acc_ref[...] = jnp.zeros_like(acc_ref)

    x = preds_ref[...].astype(jnp.float32)     # (C, ts): classes on sublanes, samples on lanes
    lbl = labels_ref[...]                      # (1, ts) int32; -1 marks padded samples

    # Per-sample (per-lane) numerically stable log-softmax over the class axis.
    m = jnp.max(x, axis=0, keepdims=True)      # (1, ts) per-sample max
    z = x - m
    e = jnp.exp(z)                             # lane-dense EUP work
    s = jnp.sum(e, axis=0, keepdims=True)      # (1, ts) per-sample sum(exp)

    # Gather z at the label class with a one-hot mask over the (small) sublane axis.
    cls = jax.lax.broadcasted_iota(jnp.int32, x.shape, 0)
    onehot = cls == lbl                        # (C, ts); no lane matches when lbl == -1
    zg = jnp.sum(jnp.where(onehot, z, 0.0), axis=0, keepdims=True)   # (1, ts)

    logp = zg - jnp.log(s)                     # log_softmax at the label class
    p = jnp.exp(logp)                          # softmax prob at the label class

    omp = 1.0 - p
    g = int(gamma)
    if float(gamma) == g and 0 <= g <= 16:     # integer gamma -> plain VPU multiplies
        w = omp if g >= 1 else jnp.ones_like(omp)
        for _ in range(g - 1):
            w = w * omp
    else:
        w = jnp.power(omp, jnp.float32(gamma))
    loss = -(w * logp)                         # (1, ts)

    valid = lbl >= 0                           # padded (or negative) labels contribute 0
    acc_ref[...] += jnp.where(valid, loss, 0.0)

    @pl.when(i == pl.num_programs(1) - 1)
    def _finalize():
        total = jnp.sum(acc_ref[...]) * inv_n  # single cross-lane reduce, once per core
        out_ref[...] = jnp.broadcast_to(total, out_ref.shape)  # lane-dense (1,128) store


def focal_loss_pallas(preds, labels, gamma=2, samples_per_tile=2048):
    """preds: (..., C) float logits (any float dtype); labels: (...) int class ids.

    Returns the scalar focal loss, matching the PyTorch module's forward.
    """
    C = preds.shape[-1]
    preds2d = preds.reshape(-1, C)                  # keep original dtype in HBM
    labels1d = labels.reshape(-1).astype(jnp.int32)
    N = preds2d.shape[0]

    # Tile / grid geometry: sample (lane) tile must be a multiple of 128.
    ts = _round_up(max(128, min(samples_per_tile, _round_up(N, 128))), 128)
    total_blocks = _cdiv(N, ts)
    split = 2 if total_blocks >= 2 else 1           # one grid slice per TensorCore (v7x)
    blocks_per_core = _cdiv(total_blocks, split)
    n_pad = split * blocks_per_core * ts
    pad = n_pad - N

    preds_t = preds2d.T                             # (C, N): lane-dense, class-major layout
    if pad:
        preds_t = jnp.pad(preds_t, ((0, 0), (0, pad)))
        labels1d = jnp.pad(labels1d, (0, pad), constant_values=-1)
    labels_t = labels1d.reshape(1, n_pad)

    kernel = functools.partial(_focal_loss_kernel, gamma=gamma, inv_n=1.0 / N)

    partials = pl.pallas_call(
        kernel,
        out_shape=jax.ShapeDtypeStruct((1, split * 128), jnp.float32),
        grid_spec=pltpu.PrefetchScalarGridSpec(
            num_scalar_prefetch=0,
            grid=(split, blocks_per_core),
            in_specs=[
                pl.BlockSpec((1, ts), lambda c, i: (0, c * blocks_per_core + i)),   # labels
                pl.BlockSpec((C, ts), lambda c, i: (0, c * blocks_per_core + i)),   # logits
            ],
            out_specs=pl.BlockSpec((1, 128), lambda c, i: (0, c)),  # per-core partial sum
            scratch_shapes=[pltpu.VMEM((1, ts), jnp.float32)],      # lane-dense accumulator
        ),
        compiler_params=pltpu.CompilerParams(
            dimension_semantics=("parallel", "arbitrary"),
        ),
    )(labels_t, preds_t)

    # Each 128-lane chunk holds one core's partial (loss_sum / N), replicated.
    return jnp.sum(partials.reshape(split, 128)[:, 0])


def _focal_loss_ref(preds, labels, gamma=2):
    C = preds.shape[-1]
    preds2d = preds.reshape(-1, C).astype(jnp.float32)
    labels1d = labels.reshape(-1).astype(jnp.int32)
    logsoft = jax.nn.log_softmax(preds2d, axis=1)
    logp = jnp.take_along_axis(logsoft, labels1d[:, None], axis=1)
    p = jnp.exp(logp)
    return jnp.mean(-((1.0 - p) ** gamma) * logp)


if __name__ == "__main__":
    key = jax.random.PRNGKey(0)
    k1, k2 = jax.random.split(key)

    N, C = 64, 16  # small demo: 64 samples, 16 DDI event classes
    preds = jax.random.normal(k1, (N, C), dtype=jnp.float32) * 2.0
    labels = jax.random.randint(k2, (N,), 0, C, dtype=jnp.int32)

    loss = focal_loss_pallas(preds, labels, gamma=2)
    loss = jax.block_until_ready(loss)

    ref = _focal_loss_ref(preds, labels, gamma=2)
    assert jnp.allclose(loss, ref, rtol=1e-5, atol=1e-5), (loss, ref)

    print("KERNEL_OK")
</pallas_src>

<mosaic_0001>
module attributes {stable_mosaic.version = 11 : i64} {
  func.func @_focal_loss_kernel(%arg0: i32, %arg1: i32, %arg2: memref<1x128xi32, #tpu.memory_space<vmem>>, %arg3: memref<16x128xf32, #tpu.memory_space<vmem>>, %arg4: memref<1x128xf32, #tpu.memory_space<vmem>>, %arg5: memref<1x128xf32, #tpu.memory_space<vmem>>) attributes {dimension_semantics = [#tpu.dimension_semantics<parallel>, #tpu.dimension_semantics<arbitrary>], iteration_bounds = array<i64: 1, 1>, scalar_prefetch = 0 : i64, scratch_operands = 1 : i64, tpu.core_type = #tpu.core_type<tc>, window_params = [{transform_indices = @transform_0, window_bounds = array<i64: 1, 128>}, {transform_indices = @transform_1, window_bounds = array<i64: 16, 128>}, {transform_indices = @transform_2, window_bounds = array<i64: 1, 128>}]} {
    %c0_i32 = arith.constant 0 : i32
    %0 = arith.cmpi eq, %arg1, %c0_i32 : i32
    %1 = arith.extui %0 : i1 to i32
    %c0_i32_0 = arith.constant 0 : i32
    %2 = arith.cmpi ne, %1, %c0_i32_0 : i32
    scf.if %2 {
      %cst_17 = arith.constant 0.000000e+00 : f32
      %38 = vector.broadcast %cst_17 : f32 to vector<1x128xf32>
      %c0_18 = arith.constant 0 : index
      %c0_19 = arith.constant 0 : index
      %39 = vector.load %arg5[%c0_18, %c0_19] : memref<1x128xf32, #tpu.memory_space<vmem>>, vector<1x128xf32>
      tpu.vector_store %arg5[%c0_18, %c0_19], %38 {strides = array<i32>} : memref<1x128xf32, #tpu.memory_space<vmem>>, vector<1x128xf32>,
    } else {
    }
    %c0 = arith.constant 0 : index
    %c0_1 = arith.constant 0 : index
    %3 = vector.load %arg3[%c0, %c0_1] : memref<16x128xf32, #tpu.memory_space<vmem>>, vector<16x128xf32>
    %c0_2 = arith.constant 0 : index
    %c0_3 = arith.constant 0 : index
    %4 = vector.load %arg2[%c0_2, %c0_3] : memref<1x128xi32, #tpu.memory_space<vmem>>, vector<1x128xi32>
    %cst = arith.constant dense<0xFF800000> : vector<128xf32>
    %5 = vector.multi_reduction <maximumf>, %3, %cst [0] : vector<16x128xf32> to vector<128xf32>
    %6 = vector.shape_cast %5 : vector<128xf32> to vector<1x128xf32>
    %7 = vector.broadcast %6 : vector<1x128xf32> to vector<16x128xf32>
    %8 = arith.subf %3, %7 : vector<16x128xf32>
    %9 = math.exp %8 : vector<16x128xf32>
    %cst_4 = arith.constant dense<0.000000e+00> : vector<128xf32>
    %10 = vector.multi_reduction <add>, %9, %cst_4 [0] : vector<16x128xf32> to vector<128xf32>
    %11 = vector.shape_cast %10 : vector<128xf32> to vector<1x128xf32>
    %12 = tpu.iota {dimensions = array<i32: 0>} : vector<16x128xi32>
    %13 = vector.broadcast %4 : vector<1x128xi32> to vector<16x128xi32>
    %14 = arith.cmpi eq, %12, %13 : vector<16x128xi32>
    %cst_5 = arith.constant 0.000000e+00 : f32
    %15 = vector.broadcast %cst_5 : f32 to vector<16x128xf32>
    %16 = arith.select %14, %8, %15 : vector<16x128xi1>, vector<16x128xf32>
    %cst_6 = arith.constant dense<0.000000e+00> : vector<128xf32>
    %17 = vector.multi_reduction <add>, %16, %cst_6 [0] : vector<16x128xf32> to vector<128xf32>
    %18 = vector.shape_cast %17 : vector<128xf32> to vector<1x128xf32>
    %19 = math.log %11 : vector<1x128xf32>
    %20 = arith.subf %18, %19 : vector<1x128xf32>
    %21 = math.exp %20 : vector<1x128xf32>
    %cst_7 = arith.constant 1.000000e+00 : f32
    %22 = vector.broadcast %cst_7 : f32 to vector<1x128xf32>
    %23 = arith.subf %22, %21 : vector<1x128xf32>
    %24 = arith.mulf %23, %23 : vector<1x128xf32>
    %25 = arith.mulf %24, %20 : vector<1x128xf32>
    %cst_8 = arith.constant 0.000000e+00 : f32
    %26 = vector.broadcast %cst_8 : f32 to vector<1x128xf32>
    %27 = arith.subf %26, %25 : vector<1x128xf32>
    %c0_i32_9 = arith.constant 0 : i32
    %28 = vector.broadcast %c0_i32_9 : i32 to vector<1x128xi32>
    %29 = arith.cmpi sge, %4, %28 : vector<1x128xi32>
    %c0_10 = arith.constant 0 : index
    %c0_11 = arith.constant 0 : index
    %30 = vector.load %arg5[%c0_10, %c0_11] : memref<1x128xf32, #tpu.memory_space<vmem>>, vector<1x128xf32>
    %cst_12 = arith.constant 0.000000e+00 : f32
    %31 = vector.broadcast %cst_12 : f32 to vector<1x128xf32>
    %32 = arith.select %29, %27, %31 : vector<1x128xi1>, vector<1x128xf32>
    %33 = arith.addf %30, %32 : vector<1x128xf32>
    %c0_13 = arith.constant 0 : index
    %c0_14 = arith.constant 0 : index
    %34 = vector.load %arg5[%c0_13, %c0_14] : memref<1x128xf32, #tpu.memory_space<vmem>>, vector<1x128xf32>
    tpu.vector_store %arg5[%c0_13, %c0_14], %33 {strides = array<i32>} : memref<1x128xf32, #tpu.memory_space<vmem>>, vector<1x128xf32>,
    %c0_i32_15 = arith.constant 0 : i32
    %35 = arith.cmpi eq, %arg1, %c0_i32_15 : i32
    %36 = arith.extui %35 : i1 to i32
    %c0_i32_16 = arith.constant 0 : i32
    %37 = arith.cmpi ne, %36, %c0_i32_16 : i32
    scf.if %37 {
      %c0_17 = arith.constant 0 : index
      %c0_18 = arith.constant 0 : index
      %38 = vector.load %arg5[%c0_17, %c0_18] : memref<1x128xf32, #tpu.memory_space<vmem>>, vector<1x128xf32>
      %39 = vector.shape_cast %38 : vector<1x128xf32> to vector<1x1x128xf32>
      %cst_19 = arith.constant dense<0.000000e+00> : vector<1xf32>
      %40 = vector.multi_reduction <add>, %39, %cst_19 [1, 2] : vector<1x1x128xf32> to vector<1xf32>
      %41 = vector.shape_cast %40 : vector<1xf32> to vector<1x1x1xf32>
      %42 = vector.extract %41[0, 0, 0] : f32 from vector<1x1x1xf32>
      %cst_20 = arith.constant 1.562500e-02 : f32
      %43 = arith.mulf %42, %cst_20 : f32
      %44 = vector.broadcast %43 : f32 to vector<1x128xf32>
      %c0_21 = arith.constant 0 : index
      %c0_22 = arith.constant 0 : index
      %45 = vector.load %arg4[%c0_21, %c0_22] : memref<1x128xf32, #tpu.memory_space<vmem>>, vector<1x128xf32>
      tpu.vector_store %arg4[%c0_21, %c0_22], %44 {strides = array<i32>} : memref<1x128xf32, #tpu.memory_space<vmem>>, vector<1x128xf32>,
    } else {
    }
    return
  }
  func.func @transform_0(%arg0: i32, %arg1: i32) -> (i32, i32) {
    %c1_i32 = arith.constant 1 : i32
    %0 = arith.muli %arg0, %c1_i32 : i32
    %1 = arith.addi %0, %arg1 : i32
    %c0_i32 = arith.constant 0 : i32
    %c0_i32_0 = arith.constant 0 : i32
    return %c0_i32, %1 : i32, i32
  }
  func.func @transform_1(%arg0: i32, %arg1: i32) -> (i32, i32) {
    %c1_i32 = arith.constant 1 : i32
    %0 = arith.muli %arg0, %c1_i32 : i32
    %1 = arith.addi %0, %arg1 : i32
    %c0_i32 = arith.constant 0 : i32
    %c0_i32_0 = arith.constant 0 : i32
    return %c0_i32, %1 : i32, i32
  }
  func.func @transform_2(%arg0: i32, %arg1: i32) -> (i32, i32) {
    %c0_i32 = arith.constant 0 : i32
    %c0_i32_0 = arith.constant 0 : i32
    return %c0_i32, %arg0 : i32, i32
  }
}

</mosaic_0001>

<bundles_post_ra>
// kernel: tpu_custom_call.1
= control target key start
LH: loop header
LB: loop body
LE: loop exit
PB: predicated region body
PF: predicated region fallthrough
CT: control target
= control target key end

     0   :  { %7 = vsyncpa [#allocation4], 0  ;;  %s292_s0 = inlined_call_operand.hbm [shape: s32[1,128], index: 0, kind: input, shape index: {}]   ;;  %s293_s1 = inlined_call_operand.hbm [shape: f32[16,128], index: 1, kind: input, shape index: {}]   ;;  %s294_s2 = inlined_call_operand.hbm [shape: f32[1,128], index: 2, kind: output, shape index: {}]  }
   0x1   :  { %8 = vsyncpa [#allocation7], 0 }
   0x2   :  { %9 = vsyncpa [#allocation5], 0  ;;  %s228_s9 = smov [#allocation3]   ;;  %s229_s11 = smov [#allocation6]  }
   0x3   :  { %s19_s10 = sshll.u32 %s228_s9, 4  ;;  %s31_s12 = sshll.u32 %s229_s11, 4  ;;  %s20_s10 = int_to_ptr.vmem [resolvable:$true] %s19_s10  ;;  %s249_s12 = int_to_ptr.vmem [resolvable:$true] %s31_s12 }
   0x4   :  { %s156_s15 = scalar_lea.hbm %s292_s0, 16 }
   0x5   :  { %p157_p0 = scmp.ne.s32.totalorder %s292_s0, %s156_s15  ;;  %p160_p1 = scmp.lt.u32.totalorder %s156_s15, %s292_s0 }
   0x7   :  { %p162_p2 = pnand %p160_p1, %p157_p0 }
   0x9   :  { %165 = shalt.err (!%p162_p2)
}
   0xa   :  { %s166_s20 = scalar_lea.vmem %s20_s10, 16  ;;  %s170_s21 = scalar_lea.vmem %s20_s10, 32 }
   0xb   :  { %p167_p3 = scmp.ne.s32.totalorder %s20_s10, %s166_s20  ;;  %p171_p4 = scmp.lt.s32.totalorder %s20_s10, %s20_s10 }
   0xc   :  { %p172_p5 = scmp.lt.s32.totalorder %s170_s21, %s166_s20 }
   0xe   :  { %p173_p6 = por %p172_p5, %p171_p4 }
  0x10   :  { %p174_p7 = pnand %p173_p6, %p167_p3 }
  0x12   :  { %177 = shalt.err (!%p174_p7)
}
  0x13   :  { %22 = dma.hbm_to_vmem [thread:$0]  %s292_s0, 16, %s20_s10, [#allocation4]  }
  0x14   :  { %s178_s26 = scalar_lea.hbm %s293_s1, 256 }
  0x15   :  { %p179_p8 = scmp.ne.s32.totalorder %s293_s1, %s178_s26  ;;  %p182_p9 = scmp.lt.u32.totalorder %s178_s26, %s293_s1 }
  0x17   :  { %p184_p10 = pnand %p182_p9, %p179_p8 }
  0x19   :  { %187 = shalt.err (!%p184_p10)
}
  0x1a   :  { %s188_s3 = scalar_lea.vmem %s249_s12, 256  ;;  %p193_p12 = scmp.lt.s32.totalorder %s249_s12, %s249_s12 }
  0x1b   :  { %p189_p11 = scmp.ne.s32.totalorder %s249_s12, %s188_s3  ;;  %p194_p13 = scmp.lt.s32.totalorder %s188_s3, %s188_s3 }
  0x1d   :  { %p195_p0 = por %p194_p13, %p193_p12 }
  0x1f   :  { %p196_p1 = pnand %p195_p0, %p189_p11 }
  0x21   :  { %199 = shalt.err (!%p196_p1)
}
  0x22   :  { %s230_s0 = smov 128   ;;  %s231_s4 = smov 8  }
  0x23   :  { %37 = dma.hbm_to_vmem [thread:$0]  %s293_s1, 256, %s249_s12, [#allocation7], %s230_s0, %s230_s0, %s231_s4  }
  0x24   :  { %222 = dma.done.wait [#allocation4], 16  }
  0x25   :  { %223 = vsyncadd [#allocation4], 4294967280 }
  0x26   :  { %224 = dma.done.wait [#allocation7], 256  }
  0x27   :  { %225 = vsyncadd [#allocation7], 4294967040  ;;  %v232_v0 = vmov 0.0   ;;  %v51_v1 = vld [vmem:[#allocation6] sm:$0xff]  ;;  %v52_v2 = vld [vmem:[#allocation6 + $0x8] sm:$0xff]  ;;  %v74_v7 = vlaneseq  ;;  %vm110_vm3 = vcmask 1040384  }
  0x28   :  { %50 = vst [vmem:[#allocation2] sm:$0x1] %v232_v0  ;;  %v54_v3 = vmax.f32 %v51_v1, %v52_v2  ;;  %v53_v15 = vld [vmem:[#allocation3] sm:$0x1]  ;;  %s233_s1 = smov [#allocation8]  }
  0x29   :  { %v75_v10 = vshrl.u32 %v74_v7, 7  ;;  %vm101_vm2 = vcmp.ge.s32.totalorder %v53_v15, 0  ;;  %s130_s7 = sshll.u32 %s233_s1, 4  ;;  %s131_s7 = int_to_ptr.vmem [resolvable:$true] %s130_s7 }
  0x2a   :  { %v55_v4 = vrot.slane %v54_v3, 4  ;;  %s200_s10 = scalar_lea.vmem %s131_s7, 16  ;;  %s204_s11 = scalar_lea.vmem %s131_s7, 32 }
  0x2b   :  { %v79_v14 = vsub.s32 0, %v75_v10  ;;  %v76_v18 = vadd.s32 8, %v75_v10  ;;  %p201_p2 = scmp.ne.s32.totalorder %s131_s7, %s200_s10  ;;  %p205_p3 = scmp.lt.s32.totalorder %s131_s7, %s131_s7 }
  0x2c   :  { %v56_v5 = vmax.f32 %v54_v3, %v55_v4  ;;  %p206_p4 = scmp.lt.s32.totalorder %s204_s11, %s200_s10 }
  0x2d   :  { %v80_v19 = vrot.slane %v53_v15, %v79_v14 }
  0x2e   :  { %v57_v6 = vrot.slane %v56_v5, 2  ;;  %p207_p5 = por %p206_p4, %p205_p3 }
  0x2f   :  { %vm81_vm0 = vcmp.eq.s32.totalorder %v75_v10, %v80_v19  ;;  %vm82_vm1 = vcmp.eq.s32.totalorder %v76_v18, %v80_v19  ;;  %v102_v47 = vld [vmem:[#allocation2] sm:$0x1] }
  0x30   :  { %v58_v8 = vmax.f32 %v56_v5, %v57_v6  ;;  %p208_p6 = pnand %p207_p5, %p201_p2 }
  0x32   :  { %v59_v9 = vrot.slane %v58_v8, 1 }
  0x34   :  { %v60_v11 = vmax.f32 %v58_v8, %v59_v9 }
  0x36   :  { %v61_v12 = vsub.f32 %v51_v1, %v60_v11  ;;  %v62_v13 = vsub.f32 %v52_v2, %v60_v11 }
  0x38   :  { %v63_v16 = vmul.f32 1.442695, %v61_v12  ;;  %v65_v17 = vmul.f32 1.442695, %v62_v13  ;;  %v83_v20 = vsel %vm81_vm0, %v61_v12, 0.0  ;;  %v84_v21 = vsel %vm82_vm1, %v62_v13, 0.0 }
  0x39   :  { %v85_v24 = vadd.f32 %v84_v21, %v83_v20 }
  0x3a   :  { %148 = vpow2.f32 %v63_v16 }
  0x3b   :  { %150 = vpow2.f32 %v65_v17  ;;  %v86_v27 = vrot.slane %v85_v24, 4 }
  0x3d   :  { %v87_v30 = vadd.f32 %v86_v27, %v85_v24 }
  0x3f   :  { %v88_v33 = vrot.slane %v87_v30, 2 }
  0x41   :  { %v89_v35 = vadd.f32 %v88_v33, %v87_v30 }
  0x43   :  { %v90_v36 = vrot.slane %v89_v35, 1 }
  0x44   :  { %v149_v22 = vpop.eup %148 }
  0x45   :  { %v151_v23 = vpop.eup %150  ;;  %v91_v37 = vadd.f32 %v90_v36, %v89_v35 }
  0x46   :  { %v67_v25 = vadd.f32 %v151_v23, %v149_v22 }
  0x48   :  { %v68_v26 = vrot.slane %v67_v25, 4 }
  0x4a   :  { %v69_v28 = vadd.f32 %v68_v26, %v67_v25 }
  0x4c   :  { %v70_v29 = vrot.slane %v69_v28, 2 }
  0x4e   :  { %v71_v31 = vadd.f32 %v70_v29, %v69_v28 }
  0x50   :  { %v72_v32 = vrot.slane %v71_v31, 1 }
  0x52   :  { %v73_v34 = vadd.f32 %v72_v32, %v71_v31 }
  0x54   :  { %152 = vlog2.f32 %v73_v34 }
  0x5e   :  { %v153_v38 = vpop.eup %152 }
  0x5f   :  { %v93_v39 = vmul.f32 0.6931472, %v153_v38 }
  0x61   :  { %v94_v40 = vsub.f32 %v91_v37, %v93_v39 }
  0x63   :  { %v95_v41 = vmul.f32 1.442695, %v94_v40 }
  0x65   :  { %154 = vpow2.f32 %v95_v41 }
  0x6f   :  { %v155_v42 = vpop.eup %154 }
  0x70   :  { %v97_v43 = vsub.f32 1.0, %v155_v42 }
  0x72   :  { %v98_v44 = vmul.f32 %v97_v43, %v97_v43 }
  0x74   :  { %v99_v45 = vmul.f32 %v98_v44, %v94_v40 }
  0x76   :  { %v100_v46 = vsub.f32 0.0, %v99_v45 }
  0x78   :  { %v103_v48 = vsel %vm101_vm2, %v100_v46, 0.0 }
  0x79   :  { %v104_v49 = vadd.f32 %v103_v48, %v102_v47 }
  0x7b   :  { %105 = vst [vmem:[#allocation2] sm:$0x1] %v104_v49 }
  0x82   :  { %v109_v50 = vld [vmem:[#allocation2] sm:$0x1] }
  0x83   :  { %v111_v51 = vsel %vm110_vm3, %v109_v50, 0.0 }
  0x84   :  { %112 = vadd.xlane.f32.xlu0 %v111_v51 }
 0x111   :  { %v113_v52 = vpop.xlane.xlu0 %112 }
 0x112   :  { %v114_v53 = vrot.slane %v113_v52, 4 }
 0x114   :  { %v115_v54 = vadd.f32 %v114_v53, %v113_v52 }
 0x116   :  { %v116_v55 = vrot.slane %v115_v54, 2 }
 0x118   :  { %v117_v56 = vadd.f32 %v116_v55, %v115_v54 }
 0x11a   :  { %v118_v57 = vrot.slane %v117_v56, 1 }
 0x11c   :  { %v119_v58 = vadd.f32 %v118_v57, %v117_v56 }
 0x11e   :  { %140 = vpush %v119_v58 }
 0x14f   :  { %s141_s8 = spop %140 }
 0x150   :  { %s121_s9 = smul.f32 0.015625, %s141_s8 }
 0x152   :  { %v122_v59 = vstv %s121_s9 }
 0x153   :  { %123 = vst [vmem:[#allocation8] sm:$0x1] %v122_v59 }
 0x154   :  { %211 = shalt.err (!%p208_p6)
}
 0x155   :  { %s212_s14 = scalar_lea.hbm %s294_s2, 16 }
 0x156   :  { %p213_p7 = scmp.ne.s32.totalorder %s294_s2, %s212_s14  ;;  %p216_p8 = scmp.lt.u32.totalorder %s212_s14, %s294_s2 }
 0x158   :  { %p218_p9 = pnand %p216_p8, %p213_p7 }
 0x15a   :  { %221 = shalt.err (!%p218_p9)
}
 0x15b   :  { %133 = dma.vmem_to_hbm [thread:$0]  %s131_s7, 16, %s294_s2, [#allocation5]  }
 0x15c   :  { %226 = dma.done.wait [#allocation5], 16  }
 0x15d   :  { %227 = vsyncadd [#allocation5], 4294967280 }
 0x15e   :  { %137 = vsyncpa [#allocation4], 1 }
 0x15f   :  { %138 = vsyncpa [#allocation7], 1 }
 0x160   :  { %139 = vsyncpa [#allocation5], 1 }

</bundles_post_ra>
